<compile_context>
chip_gen: v5e
topology: v5e:2x2
jax: 0.10.0
libtpu: 0.0.40
codegen_flags: <defaults>
</compile_context>

<pallas_src>
import functools

import jax
import jax.numpy as jnp
from jax.experimental import pallas as pl
from jax.experimental.pallas import tpu as pltpu

RMS_EPS = 1e-6
NEG_BIG = -1e30   # additive causal bias; exp() underflows to exactly 0 (no -inf NaN hazard)


# --------------------------------------------------------------------------- helpers
def _vmem_limit_bytes():
    """Per-generation VMEM budget: ~100 MiB on 128-MiB parts (v5e/v6e), ~48 MiB on v7x."""
    try:
        cap = pltpu.get_tpu_info().vmem_capacity_bytes
    except Exception:
        cap = 64 * 1024 * 1024     # conservative fallback, safe on every generation
    return int(min(cap - 16 * 1024 * 1024, 100 * 1024 * 1024))


def _preferred_tile():
    """256-wide tiles keep the 2x256 MXUs (v6e/v7x) full; v5e's 4x128 MXU gains nothing past 128."""
    try:
        kind = jax.devices()[0].device_kind.lower()
    except Exception:
        kind = ""
    return 128 if "v5" in kind else 256


def _pick_tile(s, preferred):
    for t in (preferred, 512, 256, 128, 64, 32, 16, 8):
        if t <= s and s % t == 0:
            return t
    return s   # tiny / odd sequence lengths: one full-extent tile


def _weight_spec(block_shape, index_map):
    """Constant-index weight spec: single-buffered (no refetch, half the VMEM footprint)."""
    try:
        return pl.BlockSpec(block_shape, index_map, pipeline_mode=pl.Buffered(1))
    except TypeError:   # older Pallas without pipeline_mode
        return pl.BlockSpec(block_shape, index_map)


# --------------------------------------------------- Kernel A: RMSNorm + fused QKV proj
def _proj_kernel(x_ref, rmsw_ref, wqkv_ref, xn_ref, qkv_ref):
    x = x_ref[...]                                                  # (ts, H) f32
    ms = jnp.mean(x * x, axis=-1, keepdims=True)
    xn = x * jax.lax.rsqrt(ms + RMS_EPS) * rmsw_ref[...]            # RMSNorm, f32 VPU/EUP math
    xn_ref[...] = xn
    # Fused QKV: one (ts,H)@(H,3H) bf16 MXU pass, f32 accumulate, stored once as bf16.
    qkv = jnp.dot(xn.astype(jnp.bfloat16), wqkv_ref[...],
                  preferred_element_type=jnp.float32)
    qkv_ref[...] = qkv.astype(jnp.bfloat16)


# ----------------------------------- Kernel B: flash attention + out-proj + residual
def _flash_kernel(xn_ref, q_ref, k_ref, v_ref, wo_ref, o_ref,
                  m_ref, l_ref, acc_ref, *, tile):
    qi = pl.program_id(1)
    h = pl.program_id(2)
    kv = pl.program_id(3)

    # Initialise the resident output block once per (batch, q-tile): residual = normed x
    # (the module reassigns x = norm(x) before the residual add).
    @pl.when(jnp.logical_and(h == 0, kv == 0))
    def _():
        o_ref[...] = xn_ref[...]

    # Reset the online-softmax state at the start of every (q-tile, head) KV sweep.
    @pl.when(kv == 0)
    def _():
        m_ref[...] = jnp.full(m_ref.shape, -jnp.inf, jnp.float32)
        l_ref[...] = jnp.zeros(l_ref.shape, jnp.float32)
        acc_ref[...] = jnp.zeros(acc_ref.shape, jnp.float32)

    # Causal skip: KV tiles strictly above the diagonal contribute nothing.
    @pl.when(kv <= qi)
    def _():
        qh = q_ref[...]                                             # (tq, d) bf16; 1/sqrt(d) folded into Wq
        kh = k_ref[...]                                             # (tk, d) bf16
        s = jax.lax.dot_general(qh, kh, (((1,), (1,)), ((), ())),   # contract on d, no transpose
                                preferred_element_type=jnp.float32)  # (tq, tk) f32

        # Per-tile causal bias from iota -- recomputed per tile (cheap VALU filler),
        # never a full (S,S) array.
        rows = qi * tile + jax.lax.broadcasted_iota(jnp.int32, s.shape, 0)
        cols = kv * tile + jax.lax.broadcasted_iota(jnp.int32, s.shape, 1)
        s = s + jnp.where(cols > rows, jnp.float32(NEG_BIG), jnp.float32(0.0))

        # Online softmax (f32; exp on the EUP).
        m_prev = m_ref[...]
        m_new = jnp.maximum(m_prev, jnp.max(s, axis=-1, keepdims=True))
        alpha = jnp.exp(m_prev - m_new)
        p = jnp.exp(s - m_new)
        l_ref[...] = alpha * l_ref[...] + jnp.sum(p, axis=-1, keepdims=True)
        acc_ref[...] = alpha * acc_ref[...] + jnp.dot(
            p.astype(jnp.bfloat16), v_ref[...], preferred_element_type=jnp.float32)
        m_ref[...] = m_new

    # The diagonal tile is the last contributing KV tile for this (q-tile, head):
    # normalise and fold this head straight into the output projection.
    @pl.when(kv == qi)
    def _():
        # TODO(synk): pl.reciprocal(approx=True) leaves softmax rows ~1e-3 off exact
        #             normalisation; switch to an exact divide if this feeds training.
        inv_l = pl.reciprocal(l_ref[...], approx=True)              # EUP slot; frees VALU
        oh = (acc_ref[...] * inv_l).astype(jnp.bfloat16)            # (tq, d)
        o_ref[...] = o_ref[...] + jnp.dot(oh, wo_ref[...],
                                          preferred_element_type=jnp.float32)


# ------------------------------------------------------------------------- wrapper
def simple_attention(x, rms_w, wq, wk, wv, wo, mask=None, *, num_heads):
    """x: [B, S, H] f32.  wq/wk/wv/wo: PyTorch-layout [out, in].  mask must be None (causal)."""
    B, S, H = x.shape
    assert H % num_heads == 0, "hidden_dim must be divisible by num_heads"
    d = H // num_heads
    if mask is not None:
        # TODO(synk): the module's explicit-mask path is broken (`if mask:` on a tensor,
        #             `mask * -inf` -> NaN); only the mask=None (causal) path is implemented.
        raise NotImplementedError("only the causal (mask=None) path is supported")

    # ---- wrapper-side layout plumbing (no compute hoisting) ----
    scale = 1.0 / (d ** 0.5)
    # Fused [Wq*scale | Wk | Wv] in [in, out] layout, cast to bf16 once.
    wqkv_t = jnp.concatenate([wq.T * scale, wk.T, wv.T], axis=1).astype(jnp.bfloat16)  # (H, 3H)
    # Per-head output-projection slabs: rows h*d:(h+1)*d of Wo^T (free reshape, no transpose).
    wo_hm = wo.T.reshape(num_heads, d, H).astype(jnp.bfloat16)                         # (nh, d, H)
    rms_w2d = rms_w.reshape(1, H).astype(jnp.float32)

    tile = _pick_tile(S, _preferred_tile())
    n_t = S // tile
    vmem_limit = _vmem_limit_bytes()

    # ---------------- Kernel A: RMSNorm + fused QKV projection ----------------
    # TODO(synk): for very large H on v7x (64 MiB VMEM) add an N-tile grid axis over the
    #             3H output dim instead of keeping the (H,3H) weight fully resident.
    xn, qkv = pl.pallas_call(
        _proj_kernel,
        out_shape=(jax.ShapeDtypeStruct((B, S, H), jnp.float32),
                   jax.ShapeDtypeStruct((B, S, 3 * H), jnp.bfloat16)),
        grid_spec=pltpu.PrefetchScalarGridSpec(
            num_scalar_prefetch=0,
            grid=(B, n_t),
            in_specs=[
                pl.BlockSpec((pl.Squeezed(), tile, H), lambda b, si: (b, si, 0)),   # x
                _weight_spec((1, H), lambda b, si: (0, 0)),                         # RMSNorm weight
                _weight_spec((H, 3 * H), lambda b, si: (0, 0)),                     # fused Wqkv^T
            ],
            out_specs=[
                pl.BlockSpec((pl.Squeezed(), tile, H), lambda b, si: (b, si, 0)),       # xn (f32)
                pl.BlockSpec((pl.Squeezed(), tile, 3 * H), lambda b, si: (b, si, 0)),   # qkv (bf16)
            ],
        ),
        compiler_params=pltpu.CompilerParams(
            dimension_semantics=("parallel", "parallel"),
            vmem_limit_bytes=vmem_limit,
        ),
    )(x, rms_w2d, wqkv_t)

    # Head-major views of q/k/v: (B,S,3H) -> (3,B,nh,S,d).  Pure layout plumbing in XLA so
    # kernel B's per-head blocks are contiguous, lane-dense (tq,d)/(tk,d) DMAs.
    # TODO(synk): fold this transpose into kernel A (einshape on the projection output)
    #             to save one extra HBM pass at very large S*H.
    qkv_hm = qkv.reshape(B, S, 3, num_heads, d).transpose(2, 0, 3, 1, 4)
    q_hm, k_hm, v_hm = qkv_hm[0], qkv_hm[1], qkv_hm[2]

    # ------------- Kernel B: flash attention + out-proj + residual -------------
    # Causal skip on DMA too: masked KV tiles re-point their index_map at the diagonal
    # tile, so the block index doesn't change and Pallas skips the fetch.
    kv_idx = lambda b, qi, h, kv: (b, h, jnp.minimum(kv, qi), 0)
    out = pl.pallas_call(
        functools.partial(_flash_kernel, tile=tile),
        out_shape=jax.ShapeDtypeStruct((B, S, H), jnp.float32),
        grid_spec=pltpu.PrefetchScalarGridSpec(
            num_scalar_prefetch=0,
            grid=(B, n_t, num_heads, n_t),
            in_specs=[
                pl.BlockSpec((pl.Squeezed(), tile, H),
                             lambda b, qi, h, kv: (b, qi, 0)),                       # xn (residual)
                pl.BlockSpec((pl.Squeezed(), pl.Squeezed(), tile, d),
                             lambda b, qi, h, kv: (b, h, qi, 0)),                    # q
                pl.BlockSpec((pl.Squeezed(), pl.Squeezed(), tile, d), kv_idx),       # k
                pl.BlockSpec((pl.Squeezed(), pl.Squeezed(), tile, d), kv_idx),       # v
                pl.BlockSpec((pl.Squeezed(), d, H),
                             lambda b, qi, h, kv: (h, 0, 0)),                        # Wo_h slab
            ],
            out_specs=pl.BlockSpec((pl.Squeezed(), tile, H),
                                   lambda b, qi, h, kv: (b, qi, 0)),
            scratch_shapes=[
                pltpu.VMEM((tile, 1), jnp.float32),   # m  (running max)
                pltpu.VMEM((tile, 1), jnp.float32),   # l  (running denominator)
                pltpu.VMEM((tile, d), jnp.float32),   # acc (running numerator)
            ],
        ),
        compiler_params=pltpu.CompilerParams(
            dimension_semantics=("parallel", "parallel", "arbitrary", "arbitrary"),
            vmem_limit_bytes=vmem_limit,
        ),
    )(xn, q_hm, k_hm, v_hm, wo_hm)
    return out


# ------------------------------------------------------------------------ reference
def _reference(x, rms_w, wq, wk, wv, wo, num_heads):
    """Pure-JAX f32 reference of the intended forward pass (module semantics)."""
    B, S, H = x.shape
    d = H // num_heads
    xn = x * jax.lax.rsqrt(jnp.mean(x * x, -1, keepdims=True) + RMS_EPS) * rms_w

    def proj(w):
        y = jnp.einsum("bsh,oh->bso", xn, w)
        return y.reshape(B, S, num_heads, d).transpose(0, 2, 1, 3)

    q, k, v = proj(wq), proj(wk), proj(wv)
    logits = jnp.einsum("bhqd,bhkd->bhqk", q, k) / jnp.sqrt(jnp.float32(d))
    mask = jnp.triu(jnp.ones((S, S), jnp.float32), k=1)
    logits = jnp.where(mask > 0.5, -jnp.inf, logits)
    p = jax.nn.softmax(logits, axis=-1)
    o = jnp.einsum("bhqk,bhkd->bhqd", p, v).transpose(0, 2, 1, 3).reshape(B, S, H)
    return jnp.einsum("bsh,oh->bso", o, wo) + xn


if __name__ == "__main__":
    B, S, H, NUM_HEADS = 2, 8, 32, 4

    key = jax.random.PRNGKey(0)
    kx, kq, kk, kv, ko = jax.random.split(key, 5)

    x = jax.random.normal(kx, (B, S, H), jnp.float32)
    w_scale = 1.0 / jnp.sqrt(jnp.float32(H))
    wq = jax.random.normal(kq, (H, H), jnp.float32) * w_scale
    wk = jax.random.normal(kk, (H, H), jnp.float32) * w_scale
    wv = jax.random.normal(kv, (H, H), jnp.float32) * w_scale
    wo = jax.random.normal(ko, (H, H), jnp.float32) * w_scale
    rms_w = jnp.ones((H,), jnp.float32)

    out = simple_attention(x, rms_w, wq, wk, wv, wo, mask=None, num_heads=NUM_HEADS)
    out = jax.block_until_ready(out)

    ref = _reference(x, rms_w, wq, wk, wv, wo, NUM_HEADS)
    assert out.shape == (B, S, H)
    # Tolerance reflects bf16 MXU operands + approx reciprocal vs. the pure-f32 reference;
    # real bugs (wrong mask / residual / head split) produce O(1) errors, easily caught.
    assert jnp.allclose(out, ref, atol=5e-2, rtol=5e-2), "mismatch vs pure-JAX reference"

    print("KERNEL_OK")
</pallas_src>

<mosaic_0001>
module attributes {stable_mosaic.version = 11 : i64} {
  func.func @_proj_kernel(%arg0: i32, %arg1: i32, %arg2: memref<1x8x32xf32, #tpu.memory_space<vmem>>, %arg3: memref<1x32xf32, #tpu.memory_space<vmem>>, %arg4: memref<32x96xbf16, #tpu.memory_space<vmem>>, %arg5: memref<1x8x32xf32, #tpu.memory_space<vmem>>, %arg6: memref<1x8x96xbf16, #tpu.memory_space<vmem>>) attributes {dimension_semantics = [#tpu.dimension_semantics<parallel>, #tpu.dimension_semantics<parallel>], iteration_bounds = array<i64: 2, 1>, scalar_prefetch = 0 : i64, scratch_operands = 0 : i64, tpu.core_type = #tpu.core_type<tc>, window_params = [{transform_indices = @transform_0, window_bounds = array<i64: 1, 8, 32>}, {pipeline_mode = #tpu.pipeline_mode<synchronous>, transform_indices = @transform_1, window_bounds = array<i64: 1, 32>}, {pipeline_mode = #tpu.pipeline_mode<synchronous>, transform_indices = @transform_2, window_bounds = array<i64: 32, 96>}, {transform_indices = @transform_3, window_bounds = array<i64: 1, 8, 32>}, {transform_indices = @transform_4, window_bounds = array<i64: 1, 8, 96>}]} {
    %c0 = arith.constant 0 : index
    %c0_0 = arith.constant 0 : index
    %c0_1 = arith.constant 0 : index
    %0 = vector.load %arg2[%c0, %c0_0, %c0_1] : memref<1x8x32xf32, #tpu.memory_space<vmem>>, vector<1x8x32xf32>
    %1 = vector.shape_cast %0 : vector<1x8x32xf32> to vector<8x32xf32>
    %2 = arith.mulf %1, %1 : vector<8x32xf32>
    %cst = arith.constant dense<0.000000e+00> : vector<8xf32>
    %3 = vector.multi_reduction <add>, %2, %cst [1] : vector<8x32xf32> to vector<8xf32>
    %4 = vector.shape_cast %3 : vector<8xf32> to vector<8x1xf32>
    %cst_2 = arith.constant 3.200000e+01 : f32
    %5 = vector.broadcast %cst_2 : f32 to vector<8x1xf32>
    %6 = arith.divf %4, %5 : vector<8x1xf32>
    %cst_3 = arith.constant 9.99999997E-7 : f32
    %7 = vector.broadcast %cst_3 : f32 to vector<8x1xf32>
    %8 = arith.addf %6, %7 : vector<8x1xf32>
    %9 = math.rsqrt %8 : vector<8x1xf32>
    %10 = vector.broadcast %9 : vector<8x1xf32> to vector<8x32xf32>
    %11 = arith.mulf %1, %10 : vector<8x32xf32>
    %c0_4 = arith.constant 0 : index
    %c0_5 = arith.constant 0 : index
    %12 = vector.load %arg3[%c0_4, %c0_5] : memref<1x32xf32, #tpu.memory_space<vmem>>, vector<1x32xf32>
    %13 = vector.broadcast %12 : vector<1x32xf32> to vector<8x32xf32>
    %14 = arith.mulf %11, %13 : vector<8x32xf32>
    %c0_6 = arith.constant 0 : index
    %c0_7 = arith.constant 0 : index
    %c0_8 = arith.constant 0 : index
    %15 = vector.load %arg5[%c0_6, %c0_7, %c0_8] : memref<1x8x32xf32, #tpu.memory_space<vmem>>, vector<1x8x32xf32>
    %16 = vector.shape_cast %15 : vector<1x8x32xf32> to vector<8x32xf32>
    %17 = vector.shape_cast %14 : vector<8x32xf32> to vector<1x8x32xf32>
    tpu.vector_store %arg5[%c0_6, %c0_7, %c0_8], %17 {strides = array<i32>} : memref<1x8x32xf32, #tpu.memory_space<vmem>>, vector<1x8x32xf32>,
    %18 = arith.truncf %14 : vector<8x32xf32> to vector<8x32xbf16>
    %c0_9 = arith.constant 0 : index
    %c0_10 = arith.constant 0 : index
    %19 = vector.load %arg4[%c0_9, %c0_10] : memref<32x96xbf16, #tpu.memory_space<vmem>>, vector<32x96xbf16>
    %cst_11 = arith.constant dense<0.000000e+00> : vector<8x96xf32>
    %20 = tpu.matmul %18, %19, %cst_11 {dimension_numbers = #tpu.dot_dimension_numbers<[1], [0], [0], [1], [0, 0, 1, 1], [], []>} : vector<8x32xbf16>, vector<32x96xbf16>, vector<8x96xf32> -> vector<8x96xf32>
    %21 = arith.truncf %20 : vector<8x96xf32> to vector<8x96xbf16>
    %c0_12 = arith.constant 0 : index
    %c0_13 = arith.constant 0 : index
    %c0_14 = arith.constant 0 : index
    %22 = vector.load %arg6[%c0_12, %c0_13, %c0_14] : memref<1x8x96xbf16, #tpu.memory_space<vmem>>, vector<1x8x96xbf16>
    %23 = vector.shape_cast %22 : vector<1x8x96xbf16> to vector<8x96xbf16>
    %24 = vector.shape_cast %21 : vector<8x96xbf16> to vector<1x8x96xbf16>
    tpu.vector_store %arg6[%c0_12, %c0_13, %c0_14], %24 {strides = array<i32>} : memref<1x8x96xbf16, #tpu.memory_space<vmem>>, vector<1x8x96xbf16>,
    return
  }
  func.func @transform_0(%arg0: i32, %arg1: i32) -> (i32, i32, i32) {
    %c0_i32 = arith.constant 0 : i32
    %c0_i32_0 = arith.constant 0 : i32
    return %arg0, %arg1, %c0_i32 : i32, i32, i32
  }
  func.func @transform_1(%arg0: i32, %arg1: i32) -> (i32, i32) {
    %c0_i32 = arith.constant 0 : i32
    %c0_i32_0 = arith.constant 0 : i32
    %c0_i32_1 = arith.constant 0 : i32
    return %c0_i32, %c0_i32_0 : i32, i32
  }
  func.func @transform_2(%arg0: i32, %arg1: i32) -> (i32, i32) {
    %c0_i32 = arith.constant 0 : i32
    %c0_i32_0 = arith.constant 0 : i32
    %c0_i32_1 = arith.constant 0 : i32
    return %c0_i32, %c0_i32_0 : i32, i32
  }
  func.func @transform_3(%arg0: i32, %arg1: i32) -> (i32, i32, i32) {
    %c0_i32 = arith.constant 0 : i32
    %c0_i32_0 = arith.constant 0 : i32
    return %arg0, %arg1, %c0_i32 : i32, i32, i32
  }
  func.func @transform_4(%arg0: i32, %arg1: i32) -> (i32, i32, i32) {
    %c0_i32 = arith.constant 0 : i32
    %c0_i32_0 = arith.constant 0 : i32
    return %arg0, %arg1, %c0_i32 : i32, i32, i32
  }
}

</mosaic_0001>

<bundles_post_ra>
// kernel: tpu_custom_call.1
= control target key start
LH: loop header
LB: loop body
LE: loop exit
PB: predicated region body
PF: predicated region fallthrough
CT: control target
= control target key end

     0   :  { %10 = vsyncpa [#allocation3], 0  ;;  %s1051_s0 = inlined_call_operand.hbm [shape: f32[2,8,32], index: 0, kind: input, shape index: {}]   ;;  %s1052_s1 = inlined_call_operand.hbm [shape: f32[1,32], index: 1, kind: input, shape index: {}]   ;;  %s1053_s2 = inlined_call_operand.hbm [shape: bf16[32,96], index: 2, kind: input, shape index: {}]   ;;  %s1054_s3 = inlined_call_operand.hbm [shape: f32[2,8,32], index: 3, kind: output, shape index: {0}]   ;;  %s1055_s4 = inlined_call_operand.hbm [shape: bf16[2,8,96], index: 4, kind: output, shape index: {1}]  }
   0x1   :  { %12 = vsyncpa [#allocation3 + $0x1], 0 }
   0x2   :  { %13 = vsyncpa [#allocation6], 0 }
   0x3   :  { %14 = vsyncpa [#allocation4], 0 }
   0x4   :  { %16 = vsyncpa [#allocation4 + $0x1], 0 }
   0x5   :  { %17 = vsyncpa [#allocation10], 0 }
   0x6   :  { %19 = vsyncpa [#allocation10 + $0x1], 0  ;;  %s882_s15 = smov 0   ;;  %s884_s16 = smov 0  }
   0x7   :  { %s886_s17 = smov 0   ;;  %s888_s18 = smov 0  }
   0x8   :  { %s890_s19 = smov 0   ;;  %s892_s20 = smov 0  }
   0x9 LB: > { %s515_s21 = sadd.s32 4294967295, %s850_s20   ;;  %s516_s22 = sadd.s32 4294967294, %s850_s20   ;;  %s850_s20 = sphi %s892_s20, %s25_s20   ;;  %s846_s19 = sphi %s890_s19, %s1065_s19   ;;  %s842_s18 = sphi %s888_s18, %s1064_s18   ;;  %s838_s17 = sphi %s886_s17, %s1063_s17   ;;  %s834_s16 = sphi %s884_s16, %s1062_s16   ;;  %s830_s15 = sphi %s882_s15, %s1061_s15  }
   0xa   : > { %p59_p0 = scmp.ne.s32.totalorder %s834_s16, %s830_s15  ;;  %p918_p1 = scmp.eq.s32.totalorder %s515_s21, 0 }
   0xb   : > { %p133_p2 = scmp.eq.s32.totalorder %s516_s22, 1  ;;  %p517_p4 = scmp.ge.s32.totalorder %s850_s20, 1 }
   0xc   : > { %p924_p3 = por %p918_p1, %p59_p0  ;;  %p168_p6 = scmp.lt.s32.totalorder %s850_s20, 3 }
   0xd   : > { %p929_p5 = por %p133_p2, %p59_p0  ;;  %s180_s28 = sshll.u32 %s1052_s1, 4  ;;  %s181_s28 = int_to_ptr.hbm [resolvable:$true] %s180_s28 }
   0xe   : > { %p937_p7 = pnand %p517_p4, %p168_p6  ;;  %p520_p8 = scmp.ge.s32.totalorder %s850_s20, 2 }
   0xf   : > { %s852_s30 = smov [#allocation5]   ;;  %s191_s8 = sshll.u32 %s1053_s2, 4  ;;  %s192_s8 = int_to_ptr.hbm [resolvable:$true] %s191_s8 }
  0x10   : > { %p560_p9 = pneg %p937_p7  ;;  %s182_s5 = sshll.u32 %s852_s30, 4  ;;  %s183_s5 = int_to_ptr.vmem [resolvable:$true] %s182_s5 }
  0x11   : > { %s853_s9 = smov [#allocation7]   ;;  %s854_s11 = smov 64  }
  0x12   : > { %p561_p10 = pnand %p560_p9, %p918_p1  ;;  %s193_s10 = sshll.u32 %s853_s9, 4  ;;  %s194_s10 = int_to_ptr.vmem [resolvable:$true] %s193_s10 }
  0x13   : > { %s855_s12 = smov 4   ;;  %p127_p11 = scmp.eq.s32.totalorder %s515_s21, 1 }
  0x14   : > { %563 = dma.hbm_to_vmem [thread:$0]  (!%p561_p10), %s181_s28, 16, %s183_s5, [#allocation6]  }
  0x15   : > { %566 = dma.hbm_to_vmem [thread:$0]  (!%p561_p10), %s192_s8, 256, %s194_s10, [#allocation6], %s854_s11, %s854_s11, %s855_s12  }
  0x16   : > { %s37_s13 = sadd.s32 1, %s846_s19  ;;  %s46_s14 = sadd.s32 1, %s838_s17 }
  0x17   : > { %p39_p12 = scmp.ge.s32.totalorder %s37_s13, 2  ;;  %p53_p13 = scmp.ne.s32.totalorder %s838_s17, %s834_s16 }
  0x18   : > { %p54_p0 = scmp.eq.s32.totalorder %s850_s20, 0  ;;  %p580_p4 = scmp.lt.s32.totalorder %s850_s20, 2 }
  0x19   : > { %s1067_s13 = smov (%p39_p12, %s37_s13), 0  ;;  %p958_p2 = por %p127_p11, %p53_p13 }
  0x1a   : > { %s41_s26 = ssub.s32 %s846_s19, %s1067_s13  ;;  %s207_s27 = sand.u32 1, %s838_s17  }
  0x1b   : > { %p44_p6 = scmp.eq.s32.totalorder %s41_s26, 0  ;;  %p55_p9 = por %p54_p0, %p53_p13 }
  0x1c   : > { %s521_s28 = sshll.u32 %s207_s27, 3  ;;  %s522_s21 = sshll.u32 %s846_s19, 3 }
  0x1d   : > { %s968_s30 = scalar_select %p44_p6, %s838_s17, %s46_s14  }
  0x1e   : > { %s216_s7 = scalar_lea.hbm %s1051_s0, %s522_s21  ;;  %s211_s9 = scalar_lea.vmem [#allocation2], %s521_s28 }
  0x1f   : > { %s218_s8 = sshll.u32 %s216_s7, 4  ;;  %s220_s10 = sshll.u32 %s211_s9, 4  ;;  %s219_s8 = int_to_ptr.hbm [resolvable:$true] %s218_s8  ;;  %s221_s10 = int_to_ptr.vmem [resolvable:$true] %s220_s10 }
  0x20   : > { %p568_p10 = pnand %p580_p4, %p55_p9  ;;  %s208_s11 = scalar_lea.sflag [#allocation3], %s207_s27 }
  0x21   : > { %229 = sbr.rel (%p937_p7) target bundleno = 323 (0x143), region = 32  ;;  %s978_s12 = sand.u32 (!%p937_p7), 1, %s834_s16  }
  0x22   : > { %570 = dma.hbm_to_vmem [thread:$0]  (!%p568_p10), %s219_s8, 128, %s221_s10, %s208_s11  }
  0x23   : > { %s524_s14 = sshll.u32 (!%p937_p7), %s978_s12, 3  ;;  %s232_s26 = scalar_lea.sflag (!%p937_p7), [#allocation3], %s978_s12 }
  0x24   : > { %s235_s28 = scalar_lea.vmem (!%p937_p7), [#allocation2], %s524_s14 }
  0x26   : > { %813 = dma.done.wait (%p924_p3), %s232_s26, 128  }
  0x27   : > { %815 = vsyncadd (%p924_p3), %s232_s26, 4294967168 }
  0x28   : > { %817 = dma.done.wait (%p918_p1), [#allocation6], 272  }
  0x29   : > { %819 = vsyncadd (%p918_p1), [#allocation6], 4294967024  ;;  %v277_v0 = vld [vmem:[%s235_s28] sm:$0xff]  ;;  %vm279_vm0 = vcmask 261120   ;;  %v856_v3 = vmov 32.0   ;;  %v544_v9 = vld [vmem:[#allocation7] sm:$0xff] }
  0x2a   : > { %v278_v1 = vmul.f32 %v277_v0, %v277_v0  ;;  %638 = vrcp.f32 %v856_v3  ;;  %v545_v7 = vld [vmem:[#allocation7 + $0x8] sm:$0xff]  ;;  %v637_v21 = vld [vmem:[#allocation5] ss:$0 sm:$0xff]  ;;  %s268_s23 = scalar_lea.vmem [#allocation8], %s524_s14  ;;  %s540_s24 = sshll.u32 %s842_s18, 3 }
  0x2b   : > { %335 = vmatpush.bf16.msra.mxu0 %v545_v7  ;;  %s362_s21 = scalar_lea.hbm %s1054_s3, %s540_s24  ;;  %s364_s5 = sshll.u32 %s268_s23, 4  ;;  %s365_s5 = int_to_ptr.vmem [resolvable:$true] %s364_s5 }
  0x2c   : > { %v280_v2 = vsel %vm279_vm0, %v278_v1, 0.0  ;;  %s366_s6 = sshll.u32 %s362_s21, 4  ;;  %s346_s7 = scalar_lea.sflag [#allocation4], %s978_s12  ;;  %s367_s6 = int_to_ptr.hbm [resolvable:$true] %s366_s6 }
  0x2d   : > { %281 = vadd.xlane.f32.xlu0 %v280_v2  ;;  %s746_s8 = sshra.s32 %s367_s6, 4  ;;  %s752_s14 = scalar_lea.hbm %s1054_s3, 16  ;;  %s747_s8 = int_to_ptr.hbm [resolvable:$true] %s746_s8 }
  0x2e   : > { %s748_s9 = scalar_lea.hbm %s747_s8, 8  ;;  %p753_p11 = scmp.lt.s32.totalorder %s747_s8, %s1054_s3 }
  0x2f   : > { %336 = vmatpush.bf16.msra.mxu0 %v544_v9  ;;  %p749_p1 = scmp.ne.s32.totalorder %s747_s8, %s748_s9  ;;  %p754_p12 = scmp.lt.s32.totalorder %s752_s14, %s748_s9 }
  0x30   : > { %v639_v4 = vpop.eup %638 }
  0x31   : > { %v284_v5 = vmul.f32 32.0, %v639_v4  ;;  %vm288_vm1 = vweird.f32 %v639_v4  ;;  %p750_p3 = pnand %p749_p1, %p958_p2  ;;  %p755_p13 = por %p754_p12, %p753_p11 }
  0x33   : > { %v285_v6 = vsub.f32 1.0, %v284_v5  ;;  %p751_p7 = pneg %p750_p3 }
  0x35   : > { %v286_v8 = vmul.f32 %v639_v4, %v285_v6  ;;  %p756_p0 = pnand %p755_p13, %p751_p7 }
  0x37   : > { %v287_v10 = vadd.f32 %v639_v4, %v286_v8 }
  0x39   : > { %v289_v11 = vsel %vm288_vm1, %v639_v4, %v287_v10 }
  0xa0   : > { %v282_v12 = vpop.xlane.xlu0 %281 }
  0xa1   : > { %v290_v13 = vmul.f32 %v289_v11, %v282_v12 }
  0xa3   : > { %v291_v14 = vadd.f32 1e-06, %v290_v13 }
  0xa5   : > { %640 = vrsqrt.f32 %v291_v14  ;;  %vm298_vm3 = vweird.f32 %v291_v14 }
  0xab   : > { %v641_v15 = vpop.eup %640 }
  0xac   : > { %v293_v16 = vmul.f32 %v641_v15, %v291_v14  ;;  %vm299_vm2 = vweird.f32 %v641_v15 }
  0xad   : > { %vm300_vm4 = vmor %vm298_vm3, %vm299_vm2 }
  0xae   : > { %v294_v17 = vmul.f32 %v641_v15, %v293_v16 }
  0xb0   : > { %v295_v18 = vmul.f32 0.5, %v294_v17 }
  0xb2   : > { %v296_v19 = vsub.f32 1.5, %v295_v18 }
  0xb4   : > { %v297_v20 = vmul.f32 %v641_v15, %v296_v19 }
  0xb6   : > { %v301_v22 = vsel %vm300_vm4, %v641_v15, %v297_v20 }
  0xb7   : > { %v302_v23 = vmul.f32 %v301_v22, %v277_v0 }
  0xb9   : > { %v307_v24 = vmul.f32 %v637_v21, %v302_v23 }
  0xbb   : > { %v309_v25 = vpack.c.bf16 %v307_v24, %v307_v24  ;;  %308 = vst.msk [vmem:[%s268_s23] sm:$0xff] %vm279_vm0, %v307_v24 }
  0xbd   : > { %537 = vmatmul.msk.bf16.vlgmr.msra.gmra.mxu0 %vm279_vm0, %v309_v25 }
  0xbe   : > { %759 = shalt.err (!%p756_p0)
}
  0xbf   : > { %556 = dma.vmem_to_hbm [thread:$0]  (%p958_p2), %s365_s5, 128, %s367_s6, %s346_s7   ;;  %vm343_vm5 = vcmask 781312  }
  0xc0   : > { %s541_s23 = sshll.u32 %s842_s18, 2  ;;  %s528_s24 = sshll.u32 %s978_s12, 2 }
  0xc1   : > { %s377_s21 = scalar_lea.hbm %s1055_s4, %s541_s23  ;;  %s275_s10 = scalar_lea.vmem [#allocation9], %s528_s24 }
  0xc2   : > { %s379_s11 = sshll.u32 %s275_s10, 4  ;;  %s381_s8 = sshll.u32 %s377_s21, 4  ;;  %s380_s11 = int_to_ptr.vmem [resolvable:$true] %s379_s11  ;;  %s382_s8 = int_to_ptr.hbm [resolvable:$true] %s381_s8 }
  0xc3   : > { %s351_s9 = scalar_lea.sflag [#allocation10], %s978_s12  ;;  %s774_s14 = sshra.s32 %s382_s8, 4  ;;  %s775_s14 = int_to_ptr.hbm [resolvable:$true] %s774_s14 }
  0xc4   : > { %s776_s5 = scalar_lea.hbm %s775_s14, 4  ;;  %s780_s7 = scalar_lea.hbm %s1055_s4, 8 }
  0xc5   : > { %p777_p4 = scmp.ne.s32.totalorder %s775_s14, %s776_s5  ;;  %p781_p10 = scmp.lt.s32.totalorder %s775_s14, %s1055_s4 }
  0xc6   : > { %p782_p1 = scmp.lt.s32.totalorder %s780_s7, %s776_s5 }
  0xc7   : > { %p778_p6 = pnand %p777_p4, %p958_p2 }
  0xc8   : > { %p783_p3 = por %p782_p1, %p781_p10 }
  0xc9   : > { %p779_p9 = pneg %p778_p6 }
  0xcb   : > { %p784_p7 = pnand %p783_p3, %p779_p9 }
 0x13a   : > { %v338_v26 = vpop.f32.mrf.mxu0 }
 0x13b   : > { %v342_v27 = vpack.c.bf16 %v338_v26, %v338_v26 }
 0x13d   : > { %344 = vst.msk [vmem:[%s275_s10] sm:$0xf] %vm343_vm5, %v342_v27 }
 0x13e   : > { %787 = shalt.err (!%p784_p7)
}
 0x13f   : > { %557 = dma.vmem_to_hbm [thread:$0]  (%p958_p2), %s380_s11, 64, %s382_s8, %s351_s9  }
 0x142   : > { %v340_v28 = vpop.f32.mrf.mxu0 }
 0x143 PF: > { %s393_s12 = sand.u32 1, %s830_s15   ;;  %p572_p11 = pnand %p520_p8, %p929_p5 }
 0x144   : > { %s394_s23 = scalar_lea.sflag [#allocation4], %s393_s12 }
 0x145   : > { %p573_p12 = pneg %p572_p11 }
 0x147   : > { %821 = dma.done.wait (%p573_p12), %s394_s23, 128  }
 0x148   : > { %823 = vsyncadd (%p573_p12), %s394_s23, 4294967168  ;;  %s404_s24 = scalar_lea.sflag [#allocation10], %s393_s12 }
 0x149   : > { %825 = dma.done.wait (%p573_p12), %s404_s24, 64  }
 0x14a   : > { %827 = vsyncadd (%p573_p12), %s404_s24, 4294967232  ;;  %s25_s20 = sadd.s32 1, %s850_s20   ;;  %s1061_s15 = smov %s834_s16 }
 0x14b   : > { %p22_p13 = scmp.ge.s32.totalorder %s25_s20, 4   ;;  %s1062_s16 = smov %s838_s17 }
 0x14c   : > { %s1063_s17 = smov %s968_s30  ;;  %s1064_s18 = smov %s846_s19 }
 0x14d   : > { %s1065_s19 = smov %s1067_s13  ;;  %24 = sbr.rel (!%p22_p13) target bundleno = 9 (0x9), region = 102 }
 0x152   :  { %410 = vsyncpa [#allocation3], 1 }
 0x153   :  { %412 = vsyncpa [#allocation3 + $0x1], 1 }
 0x154   :  { %413 = vsyncpa [#allocation6], 1 }
 0x155   :  { %414 = vsyncpa [#allocation4], 1 }
 0x156   :  { %416 = vsyncpa [#allocation4 + $0x1], 1 }
 0x157   :  { %417 = vsyncpa [#allocation10], 1 }
 0x158   :  { %419 = vsyncpa [#allocation10 + $0x1], 1 }

</bundles_post_ra>
